<compile_context>
chip_gen: v6e
topology: v6e:2x2x1
jax: 0.10.0
libtpu: 0.0.40
codegen_flags: <defaults>
</compile_context>

<pallas_src>
import functools

import jax
import jax.numpy as jnp
import numpy as np
from jax.experimental import pallas as pl
from jax.experimental.pallas import tpu as pltpu


def _round_up(x, m):
    return ((x + m - 1) // m) * m


def _conv_bn_act_kernel(p_ref, w_ref, shift_ref, o_ref, *, activation):
    # p_ref:     (TM, Kp)   im2col patches tile (bf16)
    # w_ref:     (Kp, OCp)  flattened conv weight with BN scale folded in (bf16)
    # shift_ref: (1, OCp)   folded BN shift = beta - mean * gamma/sqrt(var+eps)  (f32)
    # o_ref:     (TM, OCp)  output tile (f32)
    acc = jnp.dot(p_ref[...], w_ref[...], preferred_element_type=jnp.float32)
    y = acc + shift_ref[...]
    if activation == "relu":
        y = jnp.maximum(y, 0.0)
    elif activation == "hardswish":
        # F.hardswish(x) = x * relu6(x + 3) / 6
        y = y * jnp.clip(y + 3.0, 0.0, 6.0) * (1.0 / 6.0)
    elif activation is not None:
        raise ValueError(f"unsupported activation {activation}")
    o_ref[...] = y.astype(o_ref.dtype)


def conv_bn_layer(
    x_nchw,
    weight,                      # (OC, C, KH, KW)  -- PyTorch conv weight layout
    gamma, beta,                 # (OC,) BN affine params
    running_mean, running_var,   # (OC,) BN running stats
    *,
    stride=1,
    padding=0,
    use_activation=True,
    activation="hardswish",
    eps=1e-5,
    tile_m=512,
):
    N, C, H, W = x_nchw.shape
    OC, Cw, KH, KW = weight.shape
    assert Cw == C, "groups != 1 not supported"
    s = stride
    OH = (H + 2 * padding - KH) // s + 1
    OW = (W + 2 * padding - KW) // s + 1

    # ---- glue: NCHW -> NHWC, im2col patches [N*OH*OW, K] (f32) ----
    x = jnp.transpose(x_nchw, (0, 2, 3, 1)).astype(jnp.float32)   # NHWC
    xp = jnp.pad(x, ((0, 0), (padding, padding), (padding, padding), (0, 0)))
    cols = []
    for kh in range(KH):
        for kw in range(KW):
            cols.append(xp[:, kh:kh + (OH - 1) * s + 1:s, kw:kw + (OW - 1) * s + 1:s, :])
    patches = jnp.concatenate(cols, axis=-1)               # (N, OH, OW, KH*KW*C)
    K = KH * KW * C
    M = N * OH * OW
    patches = patches.reshape(M, K)

    # flatten weight to match patch ordering (kh, kw, c) -> OC
    w_mat = jnp.transpose(weight.astype(jnp.float32), (2, 3, 1, 0)).reshape(K, OC)

    # fold BN (inference semantics): y = conv(x)*scale + shift
    # scale is folded directly into the weights -> kernel epilogue is add-only.
    scale = (gamma.astype(jnp.float32) /
             jnp.sqrt(running_var.astype(jnp.float32) + eps))
    shift = beta.astype(jnp.float32) - running_mean.astype(jnp.float32) * scale
    w_mat = w_mat * scale[None, :]

    # ---- pad to hardware-friendly shapes ----
    OC_pad = _round_up(OC, 128)                 # lane-dense output (unmasked vst)
    K_pad = _round_up(K, 128)                   # clean MXU / vreg tiles
    tile_m = min(tile_m, _round_up(M, 8))       # don't over-pad tiny inputs
    M_pad = _round_up(M, tile_m)

    patches = jnp.pad(patches, ((0, M_pad - M), (0, K_pad - K))).astype(jnp.bfloat16)
    w_mat = jnp.pad(w_mat, ((0, K_pad - K), (0, OC_pad - OC))).astype(jnp.bfloat16)
    shift2d = jnp.pad(shift.reshape(1, OC), ((0, 0), (0, OC_pad - OC)))

    act = activation if use_activation else None
    kernel = functools.partial(_conv_bn_act_kernel, activation=act)

    out_flat = pl.pallas_call(
        kernel,
        out_shape=jax.ShapeDtypeStruct((M_pad, OC_pad), jnp.float32),
        grid_spec=pltpu.PrefetchScalarGridSpec(
            num_scalar_prefetch=0,
            grid=(M_pad // tile_m,),
            in_specs=[
                pl.BlockSpec((tile_m, K_pad), lambda i: (i, 0)),
                pl.BlockSpec((K_pad, OC_pad), lambda i: (0, 0)),
                pl.BlockSpec((1, OC_pad), lambda i: (0, 0)),
            ],
            out_specs=pl.BlockSpec((tile_m, OC_pad), lambda i: (i, 0)),
        ),
        compiler_params=pltpu.CompilerParams(
            dimension_semantics=("parallel",)),
    )(patches, w_mat, shift2d)

    out = out_flat[:M, :OC].reshape(N, OH, OW, OC)
    return jnp.transpose(out, (0, 3, 1, 2))   # back to NCHW


def _reference(x, weight, gamma, beta, mean, var, *, stride, padding,
               use_activation, activation, eps=1e-5):
    y = jax.lax.conv_general_dilated(
        x.astype(jnp.float32), weight.astype(jnp.float32),
        window_strides=(stride, stride),
        padding=[(padding, padding), (padding, padding)],
        dimension_numbers=("NCHW", "OIHW", "NCHW"))
    scale = gamma / jnp.sqrt(var + eps)
    shift = beta - mean * scale
    y = y * scale[None, :, None, None] + shift[None, :, None, None]
    if use_activation:
        if activation == "relu":
            y = jnp.maximum(y, 0.0)
        else:
            y = y * jnp.clip(y + 3.0, 0.0, 6.0) / 6.0
    return y


if __name__ == "__main__":
    # Module config: in_channels=4, out_channels=8, kernel_size=3, stride=1,
    # padding=1, groups=1, use_activation=True, activation='hardswish'
    N, C, H, W = 2, 4, 16, 16
    OC, KH, KW = 8, 3, 3
    stride, padding = 1, 1
    activation = "hardswish"

    key = jax.random.PRNGKey(0)
    k_x, k_w, k_g, k_b, k_m, k_v = jax.random.split(key, 6)
    x = jax.random.normal(k_x, (N, C, H, W), dtype=jnp.float32)
    weight = jax.random.normal(k_w, (OC, C, KH, KW), dtype=jnp.float32) * 0.1
    gamma = 1.0 + 0.1 * jax.random.normal(k_g, (OC,), dtype=jnp.float32)
    beta = 0.1 * jax.random.normal(k_b, (OC,), dtype=jnp.float32)
    running_mean = 0.1 * jax.random.normal(k_m, (OC,), dtype=jnp.float32)
    running_var = jnp.abs(1.0 + 0.1 * jax.random.normal(k_v, (OC,), dtype=jnp.float32))

    out = conv_bn_layer(
        x, weight, gamma, beta, running_mean, running_var,
        stride=stride, padding=padding,
        use_activation=True, activation=activation)
    out = jax.block_until_ready(out)

    ref = _reference(x, weight, gamma, beta, running_mean, running_var,
                     stride=stride, padding=padding,
                     use_activation=True, activation=activation)
    assert out.shape == (N, OC, H, W), out.shape
    # bf16 matmul operands (f32 accumulate) => relax tolerance vs f32 reference.
    np.testing.assert_allclose(np.asarray(out), np.asarray(ref), rtol=2e-2, atol=2e-2)
    print("KERNEL_OK")
</pallas_src>

<mosaic_0001>
module attributes {stable_mosaic.version = 11 : i64} {
  func.func @_conv_bn_act_kernel(%arg0: i32, %arg1: memref<512x128xbf16, #tpu.memory_space<vmem>>, %arg2: memref<128x128xbf16, #tpu.memory_space<vmem>>, %arg3: memref<1x128xf32, #tpu.memory_space<vmem>>, %arg4: memref<512x128xf32, #tpu.memory_space<vmem>>) attributes {dimension_semantics = [#tpu.dimension_semantics<parallel>], iteration_bounds = array<i64: 1>, scalar_prefetch = 0 : i64, scratch_operands = 0 : i64, tpu.core_type = #tpu.core_type<tc>, window_params = [{transform_indices = @transform_0, window_bounds = array<i64: 512, 128>}, {pipeline_mode = #tpu.pipeline_mode<synchronous>, transform_indices = @transform_1, window_bounds = array<i64: 128, 128>}, {pipeline_mode = #tpu.pipeline_mode<synchronous>, transform_indices = @transform_2, window_bounds = array<i64: 1, 128>}, {transform_indices = @transform_3, window_bounds = array<i64: 512, 128>}]} {
    %c0 = arith.constant 0 : index
    %c0_0 = arith.constant 0 : index
    %0 = vector.load %arg1[%c0, %c0_0] : memref<512x128xbf16, #tpu.memory_space<vmem>>, vector<512x128xbf16>
    %c0_1 = arith.constant 0 : index
    %c0_2 = arith.constant 0 : index
    %1 = vector.load %arg2[%c0_1, %c0_2] : memref<128x128xbf16, #tpu.memory_space<vmem>>, vector<128x128xbf16>
    %cst = arith.constant dense<0.000000e+00> : vector<512x128xf32>
    %2 = tpu.matmul %0, %1, %cst {dimension_numbers = #tpu.dot_dimension_numbers<[1], [0], [0], [1], [0, 0, 1, 1], [], []>} : vector<512x128xbf16>, vector<128x128xbf16>, vector<512x128xf32> -> vector<512x128xf32>
    %c0_3 = arith.constant 0 : index
    %c0_4 = arith.constant 0 : index
    %3 = vector.load %arg3[%c0_3, %c0_4] : memref<1x128xf32, #tpu.memory_space<vmem>>, vector<1x128xf32>
    %4 = vector.broadcast %3 : vector<1x128xf32> to vector<512x128xf32>
    %5 = arith.addf %2, %4 : vector<512x128xf32>
    %cst_5 = arith.constant 3.000000e+00 : f32
    %6 = vector.broadcast %cst_5 : f32 to vector<512x128xf32>
    %7 = arith.addf %5, %6 : vector<512x128xf32>
    %cst_6 = arith.constant 0.000000e+00 : f32
    %cst_7 = arith.constant 6.000000e+00 : f32
    %8 = vector.broadcast %cst_6 : f32 to vector<512x128xf32>
    %9 = arith.maximumf %8, %7 : vector<512x128xf32>
    %10 = vector.broadcast %cst_7 : f32 to vector<512x128xf32>
    %11 = arith.minimumf %10, %9 : vector<512x128xf32>
    %12 = arith.mulf %5, %11 : vector<512x128xf32>
    %cst_8 = arith.constant 0.166666672 : f32
    %13 = vector.broadcast %cst_8 : f32 to vector<512x128xf32>
    %14 = arith.mulf %12, %13 : vector<512x128xf32>
    %c0_9 = arith.constant 0 : index
    %c0_10 = arith.constant 0 : index
    %15 = vector.load %arg4[%c0_9, %c0_10] : memref<512x128xf32, #tpu.memory_space<vmem>>, vector<512x128xf32>
    tpu.vector_store %arg4[%c0_9, %c0_10], %14 {strides = array<i32>} : memref<512x128xf32, #tpu.memory_space<vmem>>, vector<512x128xf32>,
    return
  }
  func.func @transform_0(%arg0: i32) -> (i32, i32) {
    %c0_i32 = arith.constant 0 : i32
    %c0_i32_0 = arith.constant 0 : i32
    return %arg0, %c0_i32 : i32, i32
  }
  func.func @transform_1(%arg0: i32) -> (i32, i32) {
    %c0_i32 = arith.constant 0 : i32
    %c0_i32_0 = arith.constant 0 : i32
    %c0_i32_1 = arith.constant 0 : i32
    return %c0_i32, %c0_i32_0 : i32, i32
  }
  func.func @transform_2(%arg0: i32) -> (i32, i32) {
    %c0_i32 = arith.constant 0 : i32
    %c0_i32_0 = arith.constant 0 : i32
    %c0_i32_1 = arith.constant 0 : i32
    return %c0_i32, %c0_i32_0 : i32, i32
  }
  func.func @transform_3(%arg0: i32) -> (i32, i32) {
    %c0_i32 = arith.constant 0 : i32
    %c0_i32_0 = arith.constant 0 : i32
    return %arg0, %c0_i32 : i32, i32
  }
}

</mosaic_0001>

<bundles_post_ra>
// kernel: tpu_custom_call.1
= control target key start
LH: loop header
LB: loop body
LE: loop exit
PB: predicated region body
PF: predicated region fallthrough
CT: control target
= control target key end

     0   :  { %8 = vsyncpa [#allocation3], 0  ;;  %s1523_s0 = inlined_call_operand.hbm [shape: bf16[512,128], index: 0, kind: input, shape index: {}]   ;;  %s1524_s1 = inlined_call_operand.hbm [shape: bf16[128,128], index: 1, kind: input, shape index: {}]   ;;  %s1525_s2 = inlined_call_operand.vmem [shape: f32[1,128], index: 2, kind: input, shape index: {}]   ;;  %s1526_s3 = inlined_call_operand.hbm [shape: f32[512,128], index: 3, kind: output, shape index: {}]  }
   0x1   :  { %9 = vsyncpa [#allocation6], 0 }
   0x2   :  { %10 = vsyncpa [#allocation4], 0  ;;  %s1352_s12 = smov [#allocation2]  }
   0x3   :  { %s16_s13 = sshll.u32 %s1352_s12, 4  ;;  %s17_s13 = int_to_ptr.vmem [resolvable:$true] %s16_s13 }
   0x4   :  { %s1294_s14 = scalar_lea.vmem %s17_s13, 4096  ;;  %p1299_p1 = scmp.lt.s32.totalorder %s17_s13, %s17_s13 }
   0x5   :  { %p1295_p0 = scmp.ne.s32.totalorder %s17_s13, %s1294_s14  ;;  %p1300_p2 = scmp.lt.s32.totalorder %s1294_s14, %s1294_s14 }
   0x7   :  { %p1301_p3 = por %p1300_p2, %p1299_p1 }
   0x9   :  { %p1302_p4 = pnand %p1301_p3, %p1295_p0 }
   0xb   :  { %1305 = shalt.err (!%p1302_p4)
}
   0xc   :  { %s1353_s15 = smov 64   ;;  %s1354_s16 = smov 4  }
   0xd   :  { %22 = dma.hbm_to_vmem [thread:$0]  %s1523_s0, 4096, %s17_s13, [#allocation3], %s1353_s15, %s1353_s15, %s1354_s16  }
   0xe   :  { %s1355_s19 = smov [#allocation5]  }
   0xf   :  { %s28_s20 = sshll.u32 %s1355_s19, 4  ;;  %s29_s20 = int_to_ptr.vmem [resolvable:$true] %s28_s20 }
  0x10   :  { %s1314_s21 = scalar_lea.vmem %s29_s20, 1024  ;;  %p1319_p6 = scmp.lt.s32.totalorder %s29_s20, %s29_s20 }
  0x11   :  { %p1315_p5 = scmp.ne.s32.totalorder %s29_s20, %s1314_s21  ;;  %p1320_p7 = scmp.lt.s32.totalorder %s1314_s21, %s1314_s21 }
  0x13   :  { %p1321_p8 = por %p1320_p7, %p1319_p6 }
  0x15   :  { %p1322_p9 = pnand %p1321_p8, %p1315_p5 }
  0x17   :  { %1325 = shalt.err (!%p1322_p9)
}
  0x18   :  { %34 = dma.hbm_to_vmem [thread:$0]  %s1524_s1, 1024, %s29_s20, [#allocation6], %s1353_s15, %s1353_s15, %s1354_s16  }
  0x19   :  { %1346 = dma.done.wait [#allocation3], 4096  }
  0x1a   :  { %1347 = vsyncadd [#allocation3], 4294963200 }
  0x1b   :  { %1348 = dma.done.wait [#allocation6], 1024  }
  0x1c   :  { %1349 = vsyncadd [#allocation6], 4294966272  ;;  %v1246_v0 = vld [vmem:[#allocation5 + $0x38] sm:$0xff]   ;;  %v1247_v1 = vld [vmem:[#allocation5 + $0x30] sm:$0xff]  }
  0x1d   :  { %1143 = vmatprep.subr.bf16.mxu0 %v1246_v0  ;;  %1223 = vmatprep.subr.bf16.mxu1 %v1246_v0  ;;  %v1248_v2 = vld [vmem:[#allocation5 + $0x28] sm:$0xff]   ;;  %v1249_v3 = vld [vmem:[#allocation5 + $0x20] sm:$0xff]   ;;  %v1250_v6 = vld [vmem:[#allocation5 + $0x18] sm:$0xff]  }
  0x1e   :  { %1144 = vmatpush3.bf16.msra.mxu0 %v1246_v0  ;;  %1231 = vmatpush3.bf16.msra.mxu1 %v1246_v0  ;;  %v1254_v4 = vld [vmem:[#allocation2] sm:$0xff]   ;;  %v1251_v7 = vld [vmem:[#allocation5 + $0x10] sm:$0xff]   ;;  %v1252_v8 = vld [vmem:[#allocation5 + $0x8] sm:$0xff]  }
  0x1f   :  { %1145 = vmatprep.subr.bf16.mxu0 %v1247_v1  ;;  %1224 = vmatprep.subr.bf16.mxu1 %v1247_v1  ;;  %v1255_v5 = vld [vmem:[#allocation2 + $0x80] sm:$0xff]   ;;  %v1256_v10 = vld [vmem:[#allocation2 + $0x8] sm:$0xff]   ;;  %v1258_v12 = vld [vmem:[#allocation2 + $0x10] sm:$0xff]  }
  0x20   :  { %1159 = vmatprep.mubr.bf16.mxu0 %v1254_v4  ;;  %1191 = vmatprep.mubr.bf16.mxu1 %v1255_v5  ;;  %v1253_v9 = vld [vmem:[#allocation5] sm:$0xff]   ;;  %v1257_v11 = vld [vmem:[#allocation2 + $0x88] sm:$0xff]   ;;  %v1259_v13 = vld [vmem:[#allocation2 + $0x90] sm:$0xff]  }
  0x21   :  { %v1260_v14 = vld [vmem:[#allocation2 + $0x18] sm:$0xff]   ;;  %v1262_v16 = vld [vmem:[#allocation2 + $0x20] sm:$0xff]   ;;  %v1264_v18 = vld [vmem:[#allocation2 + $0x28] sm:$0xff]  }
  0x22   :  { %1146 = vmatpush3.bf16.msra.mxu0 %v1247_v1  ;;  %1232 = vmatpush3.bf16.msra.mxu1 %v1247_v1  ;;  %v1261_v15 = vld [vmem:[#allocation2 + $0x98] sm:$0xff]   ;;  %v1263_v17 = vld [vmem:[#allocation2 + $0xa0] sm:$0xff]   ;;  %v1265_v19 = vld [vmem:[#allocation2 + $0xa8] sm:$0xff]  }
  0x23   :  { %1147 = vmatprep.subr.bf16.mxu0 %v1248_v2  ;;  %1225 = vmatprep.subr.bf16.mxu1 %v1248_v2  ;;  %v1266_v20 = vld [vmem:[#allocation2 + $0x30] sm:$0xff]   ;;  %v1268_v22 = vld [vmem:[#allocation2 + $0x38] sm:$0xff]   ;;  %v1270_v24 = vld [vmem:[#allocation2 + $0x40] sm:$0xff]  }
  0x24   :  { %v1267_v21 = vld [vmem:[#allocation2 + $0xb0] sm:$0xff]   ;;  %v1269_v23 = vld [vmem:[#allocation2 + $0xb8] sm:$0xff]   ;;  %v1271_v25 = vld [vmem:[#allocation2 + $0xc0] sm:$0xff]  }
  0x25   :  { %v1272_v26 = vld [vmem:[#allocation2 + $0x48] sm:$0xff]   ;;  %v1274_v28 = vld [vmem:[#allocation2 + $0x50] sm:$0xff]   ;;  %v1276_v30 = vld [vmem:[#allocation2 + $0x58] sm:$0xff]  }
  0x26   :  { %1148 = vmatpush3.bf16.msra.mxu0 %v1248_v2  ;;  %1233 = vmatpush3.bf16.msra.mxu1 %v1248_v2  ;;  %v1273_v27 = vld [vmem:[#allocation2 + $0xc8] sm:$0xff]   ;;  %v1275_v29 = vld [vmem:[#allocation2 + $0xd0] sm:$0xff]   ;;  %v1277_v31 = vld [vmem:[#allocation2 + $0xd8] sm:$0xff]  }
  0x27   :  { %1149 = vmatprep.subr.bf16.mxu0 %v1249_v3  ;;  %1226 = vmatprep.subr.bf16.mxu1 %v1249_v3  ;;  %v1278_v32 = vld [vmem:[#allocation2 + $0x60] sm:$0xff]   ;;  %v1280_v34 = vld [vmem:[#allocation2 + $0x68] sm:$0xff]   ;;  %v1282_v36 = vld [vmem:[#allocation2 + $0x70] sm:$0xff]  }
  0x28   :  { %v1279_v33 = vld [vmem:[#allocation2 + $0xe0] sm:$0xff]   ;;  %v1281_v35 = vld [vmem:[#allocation2 + $0xe8] sm:$0xff]   ;;  %v1283_v37 = vld [vmem:[#allocation2 + $0xf0] sm:$0xff]  }
  0x29   :  { %v1284_v38 = vld [vmem:[#allocation2 + $0x78] sm:$0xff]   ;;  %v1388_v40 = vld [vmem:[%s1525_s2] ss:$0 sm:$0xff]  ;;  %s1356_s2 = smov [#allocation7]  }
  0x2a   :  { %1150 = vmatpush3.bf16.msra.mxu0 %v1249_v3  ;;  %1234 = vmatpush3.bf16.msra.mxu1 %v1249_v3  ;;  %v1285_v39 = vld [vmem:[#allocation2 + $0xf8] sm:$0xff]   ;;  %s1049_s24 = sshll.u32 %s1356_s2, 4  ;;  %s1050_s24 = int_to_ptr.vmem [resolvable:$true] %s1049_s24 }
  0x2b   :  { %1151 = vmatprep.subr.bf16.mxu0 %v1250_v6  ;;  %1227 = vmatprep.subr.bf16.mxu1 %v1250_v6  ;;  %s1326_s25 = scalar_lea.vmem %s1050_s24, 8192  ;;  %p1331_p11 = scmp.lt.s32.totalorder %s1050_s24, %s1050_s24 }
  0x2c   :  { %p1327_p10 = scmp.ne.s32.totalorder %s1050_s24, %s1326_s25  ;;  %p1332_p12 = scmp.lt.s32.totalorder %s1326_s25, %s1326_s25 }
  0x2e   :  { %1152 = vmatpush3.bf16.msra.mxu0 %v1250_v6  ;;  %1235 = vmatpush3.bf16.msra.mxu1 %v1250_v6  ;;  %p1333_p13 = por %p1332_p12, %p1331_p11 }
  0x2f   :  { %1153 = vmatprep.subr.bf16.mxu0 %v1251_v7  ;;  %1228 = vmatprep.subr.bf16.mxu1 %v1251_v7 }
  0x30   :  { %p1334_p0 = pnand %p1333_p13, %p1327_p10 }
  0x32   :  { %1154 = vmatpush3.bf16.msra.mxu0 %v1251_v7  ;;  %1236 = vmatpush3.bf16.msra.mxu1 %v1251_v7 }
  0x33   :  { %1155 = vmatprep.subr.bf16.mxu0 %v1252_v8  ;;  %1229 = vmatprep.subr.bf16.mxu1 %v1252_v8 }
  0x36   :  { %1156 = vmatpush3.bf16.msra.mxu0 %v1252_v8  ;;  %1237 = vmatpush3.bf16.msra.mxu1 %v1252_v8 }
  0x37   :  { %1157 = vmatprep.subr.bf16.mxu0 %v1253_v9  ;;  %1230 = vmatprep.subr.bf16.mxu1 %v1253_v9 }
  0x3a   :  { %1158 = vmatpush3.bf16.msra.mxu0 %v1253_v9  ;;  %1238 = vmatpush3.bf16.msra.mxu1 %v1253_v9 }
  0x3d   :  { %1160 = vmatmul.mubr.bf16.vlgmr.msra.gmra.mxu0 %v1256_v10  ;;  %1192 = vmatmul.mubr.bf16.vlgmr.msra.gmra.mxu1 %v1257_v11 }
  0x3e   :  { %1163 = vmatprep.mubr.bf16.mxu0 %v1258_v12  ;;  %1195 = vmatprep.mubr.bf16.mxu1 %v1259_v13 }
  0x45   :  { %1164 = vmatmul.mubr.bf16.gmra.mxu0 %v1260_v14  ;;  %1196 = vmatmul.mubr.bf16.gmra.mxu1 %v1261_v15 }
  0x46   :  { %1167 = vmatprep.mubr.bf16.mxu0 %v1262_v16  ;;  %1199 = vmatprep.mubr.bf16.mxu1 %v1263_v17 }
  0x4d   :  { %1168 = vmatmul.mubr.bf16.gmra.mxu0 %v1264_v18  ;;  %1200 = vmatmul.mubr.bf16.gmra.mxu1 %v1265_v19 }
  0x4e   :  { %1171 = vmatprep.mubr.bf16.mxu0 %v1266_v20  ;;  %1203 = vmatprep.mubr.bf16.mxu1 %v1267_v21 }
  0x55   :  { %1172 = vmatmul.mubr.bf16.gmra.mxu0 %v1268_v22  ;;  %1204 = vmatmul.mubr.bf16.gmra.mxu1 %v1269_v23 }
  0x56   :  { %1175 = vmatprep.mubr.bf16.mxu0 %v1270_v24  ;;  %1207 = vmatprep.mubr.bf16.mxu1 %v1271_v25 }
  0x5d   :  { %1176 = vmatmul.mubr.bf16.gmra.mxu0 %v1272_v26  ;;  %1208 = vmatmul.mubr.bf16.gmra.mxu1 %v1273_v27 }
  0x5e   :  { %1179 = vmatprep.mubr.bf16.mxu0 %v1274_v28  ;;  %1211 = vmatprep.mubr.bf16.mxu1 %v1275_v29 }
  0x65   :  { %1180 = vmatmul.mubr.bf16.gmra.mxu0 %v1276_v30  ;;  %1212 = vmatmul.mubr.bf16.gmra.mxu1 %v1277_v31 }
  0x66   :  { %1183 = vmatprep.mubr.bf16.mxu0 %v1278_v32  ;;  %1215 = vmatprep.mubr.bf16.mxu1 %v1279_v33 }
  0x6d   :  { %1184 = vmatmul.mubr.bf16.gmra.mxu0 %v1280_v34  ;;  %1216 = vmatmul.mubr.bf16.gmra.mxu1 %v1281_v35 }
  0x6e   :  { %1187 = vmatprep.mubr.bf16.mxu0 %v1282_v36  ;;  %1219 = vmatprep.mubr.bf16.mxu1 %v1283_v37 }
  0x75   :  { %1188 = vmatmul.mubr.bf16.gmra.mxu0 %v1284_v38  ;;  %1220 = vmatmul.mubr.bf16.gmra.mxu1 %v1285_v39 }
  0xfd   :  { %v1161_v41 = vpop.f32.mrf.mxu0  ;;  %v1193_v42 = vpop.f32.mrf.mxu1 }
  0xfe   :  { %v414_v43 = vadd.f32 %v1161_v41, %v1388_v40  ;;  %v542_v44 = vadd.f32 %v1193_v42, %v1388_v40 }
  0xff   :  { %v405_v45 = vpop.f32.mrf.mxu0  ;;  %v533_v46 = vpop.f32.mrf.mxu1 }
 0x100   :  { %v662_v47 = vadd.f32 3.0, %v414_v43  ;;  %v694_v48 = vadd.f32 3.0, %v542_v44  ;;  %v406_v49 = vadd.f32 %v1388_v40, %v405_v45  ;;  %v534_v50 = vadd.f32 %v1388_v40, %v533_v46 }
 0x101   :  { %v1162_v51 = vpop.f32.mrf.mxu0  ;;  %v1194_v52 = vpop.f32.mrf.mxu1 }
 0x102   :  { %v726_v53 = vmax.f32 %v662_v47, 0.0  ;;  %v758_v54 = vmax.f32 %v694_v48, 0.0  ;;  %v660_v55 = vadd.f32 3.0, %v406_v49  ;;  %v692_v56 = vadd.f32 3.0, %v534_v50 }
 0x103   :  { %v417_v57 = vadd.f32 %v1162_v51, %v1388_v40  ;;  %v545_v58 = vadd.f32 %v1194_v52, %v1388_v40  ;;  %v408_v59 = vpop.f32.mrf.mxu0  ;;  %v536_v60 = vpop.f32.mrf.mxu1 }
 0x104   :  { %v790_v61 = vmin.f32 %v726_v53, 6.0  ;;  %v822_v62 = vmin.f32 %v758_v54, 6.0  ;;  %v724_v63 = vmax.f32 %v660_v55, 0.0  ;;  %v756_v0 = vmax.f32 %v692_v56, 0.0 }
 0x105   :  { %v663_v1 = vadd.f32 3.0, %v417_v57  ;;  %v695_v2 = vadd.f32 3.0, %v545_v58  ;;  %v409_v3 = vadd.f32 %v1388_v40, %v408_v59  ;;  %v537_v4 = vadd.f32 %v1388_v40, %v536_v60  ;;  %v1165_v5 = vpop.f32.mrf.mxu0  ;;  %v1197_v6 = vpop.f32.mrf.mxu1 }
 0x106   :  { %v854_v7 = vmul.f32 %v790_v61, %v414_v43  ;;  %v886_v8 = vmul.f32 %v822_v62, %v542_v44  ;;  %v788_v9 = vmin.f32 %v724_v63, 6.0  ;;  %v820_v10 = vmin.f32 %v756_v0, 6.0 }
 0x107   :  { %v727_v11 = vmax.f32 %v663_v1, 0.0  ;;  %v759_v12 = vmax.f32 %v695_v2, 0.0  ;;  %v661_v13 = vadd.f32 3.0, %v409_v3  ;;  %v693_v14 = vadd.f32 3.0, %v537_v4  ;;  %v421_v15 = vpop.f32.mrf.mxu0  ;;  %v549_v16 = vpop.f32.mrf.mxu1 }
 0x108   :  { %v918_v17 = vmul.f32 0.16666667, %v854_v7  ;;  %v950_v18 = vmul.f32 0.16666667, %v886_v8  ;;  %v852_v19 = vmul.f32 %v788_v9, %v406_v49  ;;  %v884_v20 = vmul.f32 %v820_v10, %v534_v50 }
 0x109   :  { %v791_v21 = vmin.f32 %v727_v11, 6.0  ;;  %v823_v22 = vmin.f32 %v759_v12, 6.0  ;;  %v725_v23 = vmax.f32 %v661_v13, 0.0  ;;  %v757_v24 = vmax.f32 %v693_v14, 0.0  ;;  %v1166_v25 = vpop.f32.mrf.mxu0  ;;  %v1198_v26 = vpop.f32.mrf.mxu1 }
 0x10a   :  { %982 = vst [vmem:[#allocation7 + $0x10] sm:$0xff] %v918_v17  ;;  %1014 = vst [vmem:[#allocation7 + $0x110] sm:$0xff] %v950_v18  ;;  %v916_v27 = vmul.f32 0.16666667, %v852_v19  ;;  %v948_v28 = vmul.f32 0.16666667, %v884_v20  ;;  %v430_v29 = vadd.f32 %v1165_v5, %v1388_v40  ;;  %v558_v30 = vadd.f32 %v1197_v6, %v1388_v40 }
 0x10b   :  { %v855_v31 = vmul.f32 %v791_v21, %v417_v57  ;;  %v887_v32 = vmul.f32 %v823_v22, %v545_v58  ;;  %v789_v33 = vmin.f32 %v725_v23, 6.0  ;;  %v821_v34 = vmin.f32 %v757_v24, 6.0  ;;  %v424_v35 = vpop.f32.mrf.mxu0  ;;  %v552_v36 = vpop.f32.mrf.mxu1 }
 0x10c   :  { %980 = vst [vmem:[#allocation7] sm:$0xff] %v916_v27  ;;  %1012 = vst [vmem:[#allocation7 + $0x100] sm:$0xff] %v948_v28  ;;  %v666_v37 = vadd.f32 3.0, %v430_v29  ;;  %v698_v38 = vadd.f32 3.0, %v558_v30  ;;  %v422_v39 = vadd.f32 %v1388_v40, %v421_v15  ;;  %v550_v41 = vadd.f32 %v1388_v40, %v549_v16 }
 0x10d   :  { %v919_v42 = vmul.f32 0.16666667, %v855_v31  ;;  %v951_v43 = vmul.f32 0.16666667, %v887_v32  ;;  %v853_v44 = vmul.f32 %v789_v33, %v409_v3  ;;  %v885_v45 = vmul.f32 %v821_v34, %v537_v4  ;;  %v1169_v46 = vpop.f32.mrf.mxu0  ;;  %v1201_v47 = vpop.f32.mrf.mxu1 }
 0x10e   :  { %v730_v48 = vmax.f32 %v666_v37, 0.0  ;;  %v762_v49 = vmax.f32 %v698_v38, 0.0  ;;  %v664_v50 = vadd.f32 3.0, %v422_v39  ;;  %v696_v51 = vadd.f32 3.0, %v550_v41 }
 0x10f   :  { %983 = vst [vmem:[#allocation7 + $0x18] sm:$0xff] %v919_v42  ;;  %1015 = vst [vmem:[#allocation7 + $0x118] sm:$0xff] %v951_v43  ;;  %v917_v52 = vmul.f32 0.16666667, %v853_v44  ;;  %v949_v53 = vmul.f32 0.16666667, %v885_v45  ;;  %v433_v54 = vadd.f32 %v1166_v25, %v1388_v40  ;;  %v561_v55 = vadd.f32 %v1198_v26, %v1388_v40  ;;  %v437_v56 = vpop.f32.mrf.mxu0  ;;  %v565_v57 = vpop.f32.mrf.mxu1 }
 0x110   :  { %v794_v58 = vmin.f32 %v730_v48, 6.0  ;;  %v826_v59 = vmin.f32 %v762_v49, 6.0  ;;  %v728_v60 = vmax.f32 %v664_v50, 0.0  ;;  %v760_v61 = vmax.f32 %v696_v51, 0.0 }
 0x111   :  { %981 = vst [vmem:[#allocation7 + $0x8] sm:$0xff] %v917_v52  ;;  %1013 = vst [vmem:[#allocation7 + $0x108] sm:$0xff] %v949_v53  ;;  %v667_v62 = vadd.f32 3.0, %v433_v54  ;;  %v699_v63 = vadd.f32 3.0, %v561_v55  ;;  %v425_v0 = vadd.f32 %v1388_v40, %v424_v35  ;;  %v553_v1 = vadd.f32 %v1388_v40, %v552_v36  ;;  %v1170_v2 = vpop.f32.mrf.mxu0  ;;  %v1202_v3 = vpop.f32.mrf.mxu1 }
 0x112   :  { %v858_v4 = vmul.f32 %v794_v58, %v430_v29  ;;  %v890_v5 = vmul.f32 %v826_v59, %v558_v30  ;;  %v792_v6 = vmin.f32 %v728_v60, 6.0  ;;  %v824_v7 = vmin.f32 %v760_v61, 6.0 }
 0x113   :  { %v731_v8 = vmax.f32 %v667_v62, 0.0  ;;  %v763_v9 = vmax.f32 %v699_v63, 0.0  ;;  %v665_v10 = vadd.f32 3.0, %v425_v0  ;;  %v697_v11 = vadd.f32 3.0, %v553_v1  ;;  %v440_v12 = vpop.f32.mrf.mxu0  ;;  %v568_v13 = vpop.f32.mrf.mxu1 }
 0x114   :  { %v922_v14 = vmul.f32 0.16666667, %v858_v4  ;;  %v954_v15 = vmul.f32 0.16666667, %v890_v5  ;;  %v856_v16 = vmul.f32 %v792_v6, %v422_v39  ;;  %v888_v17 = vmul.f32 %v824_v7, %v550_v41 }
 0x115   :  { %v795_v18 = vmin.f32 %v731_v8, 6.0  ;;  %v827_v19 = vmin.f32 %v763_v9, 6.0  ;;  %v729_v20 = vmax.f32 %v665_v10, 0.0  ;;  %v761_v21 = vmax.f32 %v697_v11, 0.0  ;;  %v1406_v22 = vpop.f32.mrf.mxu0  ;;  %v1408_v23 = vpop.f32.mrf.mxu1 }
 0x116   :  { %986 = vst [vmem:[#allocation7 + $0x30] sm:$0xff] %v922_v14  ;;  %1018 = vst [vmem:[#allocation7 + $0x130] sm:$0xff] %v954_v15  ;;  %v920_v24 = vmul.f32 0.16666667, %v856_v16  ;;  %v952_v25 = vmul.f32 0.16666667, %v888_v17  ;;  %v446_v26 = vadd.f32 %v1169_v46, %v1388_v40  ;;  %v574_v27 = vadd.f32 %v1201_v47, %v1388_v40 }
 0x117   :  { %v859_v28 = vmul.f32 %v795_v18, %v433_v54  ;;  %v891_v29 = vmul.f32 %v827_v19, %v561_v55  ;;  %v793_v30 = vmin.f32 %v729_v20, 6.0  ;;  %v825_v31 = vmin.f32 %v761_v21, 6.0  ;;  %v1412_v32 = vpop.f32.mrf.mxu0  ;;  %v1414_v33 = vpop.f32.mrf.mxu1 }
 0x118   :  { %984 = vst [vmem:[#allocation7 + $0x20] sm:$0xff] %v920_v24  ;;  %1016 = vst [vmem:[#allocation7 + $0x120] sm:$0xff] %v952_v25  ;;  %v670_v34 = vadd.f32 3.0, %v446_v26  ;;  %v702_v35 = vadd.f32 3.0, %v574_v27  ;;  %v438_v36 = vadd.f32 %v1388_v40, %v437_v56  ;;  %v566_v37 = vadd.f32 %v1388_v40, %v565_v57 }
 0x119   :  { %v923_v38 = vmul.f32 0.16666667, %v859_v28  ;;  %v955_v39 = vmul.f32 0.16666667, %v891_v29  ;;  %v857_v41 = vmul.f32 %v793_v30, %v425_v0  ;;  %v889_v42 = vmul.f32 %v825_v31, %v553_v1  ;;  %v1418_v43 = vpop.f32.mrf.mxu0  ;;  %v1420_v44 = vpop.f32.mrf.mxu1 }
 0x11a   :  { %v734_v45 = vmax.f32 %v670_v34, 0.0  ;;  %v766_v46 = vmax.f32 %v702_v35, 0.0  ;;  %v668_v47 = vadd.f32 3.0, %v438_v36  ;;  %v700_v48 = vadd.f32 3.0, %v566_v37 }
 0x11b   :  { %987 = vst [vmem:[#allocation7 + $0x38] sm:$0xff] %v923_v38  ;;  %1019 = vst [vmem:[#allocation7 + $0x138] sm:$0xff] %v955_v39  ;;  %v921_v49 = vmul.f32 0.16666667, %v857_v41  ;;  %v953_v50 = vmul.f32 0.16666667, %v889_v42  ;;  %v449_v51 = vadd.f32 %v1170_v2, %v1388_v40  ;;  %v577_v52 = vadd.f32 %v1202_v3, %v1388_v40  ;;  %v1424_v53 = vpop.f32.mrf.mxu0  ;;  %v1426_v54 = vpop.f32.mrf.mxu1 }
 0x11c   :  { %v798_v55 = vmin.f32 %v734_v45, 6.0  ;;  %v830_v56 = vmin.f32 %v766_v46, 6.0  ;;  %v732_v57 = vmax.f32 %v668_v47, 0.0  ;;  %v764_v58 = vmax.f32 %v700_v48, 0.0 }
 0x11d   :  { %985 = vst [vmem:[#allocation7 + $0x28] sm:$0xff] %v921_v49  ;;  %1017 = vst [vmem:[#allocation7 + $0x128] sm:$0xff] %v953_v50  ;;  %v671_v59 = vadd.f32 3.0, %v449_v51  ;;  %v703_v60 = vadd.f32 3.0, %v577_v52  ;;  %v441_v61 = vadd.f32 %v1388_v40, %v440_v12  ;;  %v569_v62 = vadd.f32 %v1388_v40, %v568_v13  ;;  %v1430_v63 = vpop.f32.mrf.mxu0  ;;  %v1432_v0 = vpop.f32.mrf.mxu1 }
 0x11e   :  { %v862_v1 = vmul.f32 %v798_v55, %v446_v26  ;;  %v894_v2 = vmul.f32 %v830_v56, %v574_v27  ;;  %v796_v3 = vmin.f32 %v732_v57, 6.0  ;;  %v828_v4 = vmin.f32 %v764_v58, 6.0 }
 0x11f   :  { %v735_v5 = vmax.f32 %v671_v59, 0.0  ;;  %v767_v6 = vmax.f32 %v703_v60, 0.0  ;;  %v669_v7 = vadd.f32 3.0, %v441_v61  ;;  %v701_v8 = vadd.f32 3.0, %v569_v62  ;;  %v1434_v9 = vpop.f32.mrf.mxu0  ;;  %v1436_v10 = vpop.f32.mrf.mxu1 }
 0x120   :  { %v926_v11 = vmul.f32 0.16666667, %v862_v1  ;;  %v958_v12 = vmul.f32 0.16666667, %v894_v2  ;;  %v860_v14 = vmul.f32 %v796_v3, %v438_v36  ;;  %v892_v13 = vmul.f32 %v828_v4, %v566_v37 }
 0x121   :  { %v799_v15 = vmin.f32 %v735_v5, 6.0  ;;  %v831_v16 = vmin.f32 %v767_v6, 6.0  ;;  %v733_v17 = vmax.f32 %v669_v7, 0.0  ;;  %v765_v18 = vmax.f32 %v701_v8, 0.0  ;;  %v1442_v25 = vpop.f32.mrf.mxu0  ;;  %v1444_v26 = vpop.f32.mrf.mxu1 }
 0x122   :  { %990 = vst [vmem:[#allocation7 + $0x50] sm:$0xff] %v926_v11  ;;  %1022 = vst [vmem:[#allocation7 + $0x150] sm:$0xff] %v958_v12  ;;  %v924_v19 = vmul.f32 0.16666667, %v860_v14  ;;  %v956_v20 = vmul.f32 0.16666667, %v892_v13  ;;  %v462_v21 = vadd.f32 %v1406_v22, %v1388_v40  ;;  %v590_v24 = vadd.f32 %v1408_v23, %v1388_v40 }
 0x123   :  { %v863_v27 = vmul.f32 %v799_v15, %v449_v51  ;;  %v895_v28 = vmul.f32 %v831_v16, %v577_v52  ;;  %v797_v29 = vmin.f32 %v733_v17, 6.0  ;;  %v829_v30 = vmin.f32 %v765_v18, 6.0  ;;  %v1450_v46 = vpop.f32.mrf.mxu0  ;;  %v1452_v47 = vpop.f32.mrf.mxu1 }
 0x124   :  { %988 = vst [vmem:[#allocation7 + $0x40] sm:$0xff] %v924_v19  ;;  %1020 = vst [vmem:[#allocation7 + $0x140] sm:$0xff] %v956_v20  ;;  %v674_v31 = vadd.f32 3.0, %v462_v21  ;;  %v706_v34 = vadd.f32 3.0, %v590_v24  ;;  %v454_v35 = vadd.f32 %v1388_v40, %v1412_v32  ;;  %v582_v22 = vadd.f32 %v1388_v40, %v1414_v33 }
 0x125   :  { %v927_v36 = vmul.f32 0.16666667, %v863_v27  ;;  %v959_v23 = vmul.f32 0.16666667, %v895_v28  ;;  %v861_v37 = vmul.f32 %v797_v29, %v441_v61  ;;  %v893_v38 = vmul.f32 %v829_v30, %v569_v62  ;;  %v1462_v1 = vpop.f32.mrf.mxu0 }
 0x126   :  { %v738_v39 = vmax.f32 %v674_v31, 0.0  ;;  %v770_v41 = vmax.f32 %v706_v34, 0.0  ;;  %v672_v42 = vadd.f32 3.0, %v454_v35  ;;  %v704_v45 = vadd.f32 3.0, %v582_v22 }
 0x127   :  { %991 = vst [vmem:[#allocation7 + $0x58] sm:$0xff] %v927_v36  ;;  %1023 = vst [vmem:[#allocation7 + $0x158] sm:$0xff] %v959_v23  ;;  %v925_v48 = vmul.f32 0.16666667, %v861_v37  ;;  %v957_v49 = vmul.f32 0.16666667, %v893_v38  ;;  %v465_v32 = vadd.f32 %v1418_v43, %v1388_v40  ;;  %v593_v33 = vadd.f32 %v1420_v44, %v1388_v40  ;;  %v1464_v44 = vpop.f32.mrf.mxu1  ;;  %v1470_v18 = vpop.f32.mrf.mxu0 }
 0x128   :  { %v802_v50 = vmin.f32 %v738_v39, 6.0  ;;  %v834_v51 = vmin.f32 %v770_v41, 6.0  ;;  %v736_v52 = vmax.f32 %v672_v42, 0.0  ;;  %v768_v55 = vmax.f32 %v704_v45, 0.0 }
 0x129   :  { %989 = vst [vmem:[#allocation7 + $0x48] sm:$0xff] %v925_v48  ;;  %1021 = vst [vmem:[#allocation7 + $0x148] sm:$0xff] %v957_v49  ;;  %v675_v56 = vadd.f32 3.0, %v465_v32  ;;  %v707_v57 = vadd.f32 3.0, %v593_v33  ;;  %v457_v58 = vadd.f32 %v1388_v40, %v1424_v53  ;;  %v585_v59 = vadd.f32 %v1388_v40, %v1426_v54  ;;  %v1472_v19 = vpop.f32.mrf.mxu1  ;;  %v1478_v38 = vpop.f32.mrf.mxu0 }
 0x12a   :  { %v866_v60 = vmul.f32 %v802_v50, %v462_v21  ;;  %v898_v61 = vmul.f32 %v834_v51, %v590_v24  ;;  %v800_v43 = vmin.f32 %v736_v52, 6.0  ;;  %v832_v62 = vmin.f32 %v768_v55, 6.0 }
 0x12b   :  { %v739_v2 = vmax.f32 %v675_v56, 0.0  ;;  %v771_v3 = vmax.f32 %v707_v57, 0.0  ;;  %v673_v4 = vadd.f32 3.0, %v457_v58  ;;  %v705_v5 = vadd.f32 3.0, %v585_v59  ;;  %v1480_v39 = vpop.f32.mrf.mxu1 }
 0x12c   :  { %v930_v6 = vmul.f32 0.16666667, %v866_v60  ;;  %v962_v7 = vmul.f32 0.16666667, %v898_v61  ;;  %v864_v8 = vmul.f32 %v800_v43, %v454_v35  ;;  %v896_v11 = vmul.f32 %v832_v62, %v582_v22 }
 0x12d   :  { %v803_v53 = vmin.f32 %v739_v2, 6.0  ;;  %v835_v12 = vmin.f32 %v771_v3, 6.0  ;;  %v737_v14 = vmax.f32 %v673_v4, 0.0  ;;  %v769_v54 = vmax.f32 %v705_v5, 0.0 }
 0x12e   :  { %994 = vst [vmem:[#allocation7 + $0x70] sm:$0xff] %v930_v6  ;;  %1026 = vst [vmem:[#allocation7 + $0x170] sm:$0xff] %v962_v7  ;;  %v928_v13 = vmul.f32 0.16666667, %v864_v8  ;;  %v960_v15 = vmul.f32 0.16666667, %v896_v11  ;;  %v478_v16 = vadd.f32 %v1430_v63, %v1388_v40  ;;  %v606_v17 = vadd.f32 %v1432_v0, %v1388_v40 }
 0x12f   :  { %v867_v20 = vmul.f32 %v803_v53, %v465_v32  ;;  %v899_v21 = vmul.f32 %v835_v12, %v593_v33  ;;  %v801_v24 = vmin.f32 %v737_v14, 6.0  ;;  %v833_v27 = vmin.f32 %v769_v54, 6.0 }
 0x130   :  { %992 = vst [vmem:[#allocation7 + $0x60] sm:$0xff] %v928_v13  ;;  %1024 = vst [vmem:[#allocation7 + $0x160] sm:$0xff] %v960_v15  ;;  %v678_v28 = vadd.f32 3.0, %v478_v16  ;;  %v710_v29 = vadd.f32 3.0, %v606_v17  ;;  %v470_v30 = vadd.f32 %v1388_v40, %v1434_v9  ;;  %v598_v63 = vadd.f32 %v1388_v40, %v1436_v10 }
 0x131   :  { %v931_v31 = vmul.f32 0.16666667, %v867_v20  ;;  %v963_v0 = vmul.f32 0.16666667, %v899_v21  ;;  %v865_v34 = vmul.f32 %v801_v24, %v457_v58  ;;  %v897_v35 = vmul.f32 %v833_v27, %v585_v59  ;;  %v488_v58 = vpop.f32.mrf.mxu0 }
 0x132   :  { %v742_v22 = vmax.f32 %v678_v28, 0.0  ;;  %v774_v36 = vmax.f32 %v710_v29, 0.0  ;;  %v676_v23 = vadd.f32 3.0, %v470_v30  ;;  %v708_v37 = vadd.f32 3.0, %v598_v63 }
 0x133   :  { %995 = vst [vmem:[#allocation7 + $0x78] sm:$0xff] %v931_v31  ;;  %1027 = vst [vmem:[#allocation7 + $0x178] sm:$0xff] %v963_v0  ;;  %v929_v41 = vmul.f32 0.16666667, %v865_v34  ;;  %v961_v42 = vmul.f32 0.16666667, %v897_v35  ;;  %v481_v9 = vadd.f32 %v1442_v25, %v1388_v40  ;;  %v609_v10 = vadd.f32 %v1444_v26, %v1388_v40  ;;  %v616_v26 = vpop.f32.mrf.mxu1  ;;  %v1185_v12 = vpop.f32.mrf.mxu0 }
 0x134   :  { %v806_v45 = vmin.f32 %v742_v22, 6.0  ;;  %v838_v48 = vmin.f32 %v774_v36, 6.0  ;;  %v740_v49 = vmax.f32 %v676_v23, 0.0  ;;  %v772_v32 = vmax.f32 %v708_v37, 0.0 }
 0x135   :  { %993 = vst [vmem:[#allocation7 + $0x68] sm:$0xff] %v929_v41  ;;  %1025 = vst [vmem:[#allocation7 + $0x168] sm:$0xff] %v961_v42  ;;  %v679_v33 = vadd.f32 3.0, %v481_v9  ;;  %v711_v50 = vadd.f32 3.0, %v609_v10  ;;  %v473_v51 = vadd.f32 %v1388_v40, %v1450_v46  ;;  %v601_v52 = vadd.f32 %v1388_v40, %v1452_v47  ;;  %v1217_v14 = vpop.f32.mrf.mxu1  ;;  %v501_v0 = vpop.f32.mrf.mxu0 }
 0x136   :  { %v870_v55 = vmul.f32 %v806_v45, %v478_v16  ;;  %v902_v56 = vmul.f32 %v838_v48, %v606_v17  ;;  %v804_v25 = vmin.f32 %v740_v49, 6.0  ;;  %v836_v57 = vmin.f32 %v772_v32, 6.0 }
 0x137   :  { %v743_v59 = vmax.f32 %v679_v33, 0.0  ;;  %v775_v60 = vmax.f32 %v711_v50, 0.0  ;;  %v677_v61 = vadd.f32 3.0, %v473_v51  ;;  %v709_v43 = vadd.f32 3.0, %v601_v52  ;;  %v629_v34 = vpop.f32.mrf.mxu1 }
 0x138   :  { %v934_v62 = vmul.f32 0.16666667, %v870_v55  ;;  %v966_v2 = vmul.f32 0.16666667, %v902_v56  ;;  %v868_v3 = vmul.f32 %v804_v25, %v470_v30  ;;  %v900_v4 = vmul.f32 %v836_v57, %v598_v63 }
 0x139   :  { %v807_v5 = vmin.f32 %v743_v59, 6.0  ;;  %v839_v6 = vmin.f32 %v775_v60, 6.0  ;;  %v741_v46 = vmax.f32 %v677_v61, 0.0  ;;  %v773_v7 = vmax.f32 %v709_v43, 0.0  ;;  %v1218_v50 = vpop.f32.mrf.mxu1 }
 0x13a   :  { %998 = vst [vmem:[#allocation7 + $0x90] sm:$0xff] %v934_v62  ;;  %1030 = vst [vmem:[#allocation7 + $0x190] sm:$0xff] %v966_v2  ;;  %v932_v47 = vmul.f32 0.16666667, %v868_v3  ;;  %v964_v8 = vmul.f32 0.16666667, %v900_v4  ;;  %v494_v11 = vadd.f32 %v1462_v1, %v1388_v40  ;;  %v622_v53 = vadd.f32 %v1464_v44, %v1388_v40 }
 0x13b   :  { %v871_v54 = vmul.f32 %v807_v5, %v481_v9  ;;  %v903_v13 = vmul.f32 %v839_v6, %v609_v10  ;;  %v805_v15 = vmin.f32 %v741_v46, 6.0  ;;  %v837_v16 = vmin.f32 %v773_v7, 6.0  ;;  %v632_v5 = vpop.f32.mrf.mxu1 }
 0x13c   :  { %996 = vst [vmem:[#allocation7 + $0x80] sm:$0xff] %v932_v47  ;;  %1028 = vst [vmem:[#allocation7 + $0x180] sm:$0xff] %v964_v8  ;;  %v682_v17 = vadd.f32 3.0, %v494_v11  ;;  %v714_v20 = vadd.f32 3.0, %v622_v53  ;;  %v486_v21 = vadd.f32 %v1388_v40, %v1470_v18  ;;  %v614_v24 = vadd.f32 %v1388_v40, %v1472_v19 }
 0x13d   :  { %v935_v1 = vmul.f32 0.16666667, %v871_v54  ;;  %v967_v27 = vmul.f32 0.16666667, %v903_v13  ;;  %v869_v28 = vmul.f32 %v805_v15, %v473_v51  ;;  %v901_v44 = vmul.f32 %v837_v16, %v601_v52 }
 0x13e   :  { %v746_v29 = vmax.f32 %v682_v17, 0.0  ;;  %v778_v30 = vmax.f32 %v714_v20, 0.0  ;;  %v680_v63 = vadd.f32 3.0, %v486_v21  ;;  %v712_v31 = vadd.f32 3.0, %v614_v24 }
 0x13f   :  { %999 = vst [vmem:[#allocation7 + $0x98] sm:$0xff] %v935_v1  ;;  %1031 = vst [vmem:[#allocation7 + $0x198] sm:$0xff] %v967_v27  ;;  %v933_v35 = vmul.f32 0.16666667, %v869_v28  ;;  %v965_v22 = vmul.f32 0.16666667, %v901_v44  ;;  %v497_v18 = vadd.f32 %v1478_v38, %v1388_v40  ;;  %v625_v19 = vadd.f32 %v1480_v39, %v1388_v40  ;;  %v1186_v38 = vpop.f32.mrf.mxu0  ;;  %v1221_v1 = vpop.f32.mrf.mxu1 }
 0x140   :  { %v810_v36 = vmin.f32 %v746_v29, 6.0  ;;  %v842_v23 = vmin.f32 %v778_v30, 6.0  ;;  %v744_v37 = vmax.f32 %v680_v63, 0.0  ;;  %v776_v41 = vmax.f32 %v712_v31, 0.0 }
 0x141   :  { %997 = vst [vmem:[#allocation7 + $0x88] sm:$0xff] %v933_v35  ;;  %1029 = vst [vmem:[#allocation7 + $0x188] sm:$0xff] %v965_v22  ;;  %v683_v42 = vadd.f32 3.0, %v497_v18  ;;  %v715_v9 = vadd.f32 3.0, %v625_v19  ;;  %v489_v10 = vadd.f32 %v1388_v40, %v488_v58  ;;  %v617_v45 = vadd.f32 %v1388_v40, %v616_v26  ;;  %v504_v4 = vpop.f32.mrf.mxu0 }
 0x142   :  { %v874_v48 = vmul.f32 %v810_v36, %v494_v11  ;;  %v906_v49 = vmul.f32 %v842_v23, %v622_v53  ;;  %v808_v32 = vmin.f32 %v744_v37, 6.0  ;;  %v840_v33 = vmin.f32 %v776_v41, 6.0 }
 0x143   :  { %v747_v51 = vmax.f32 %v683_v42, 0.0  ;;  %v779_v39 = vmax.f32 %v715_v9, 0.0  ;;  %v681_v52 = vadd.f32 3.0, %v489_v10  ;;  %v713_v55 = vadd.f32 3.0, %v617_v45  ;;  %v645_v42 = vpop.f32.mrf.mxu1 }
 0x144   :  { %v938_v56 = vmul.f32 0.16666667, %v874_v48  ;;  %v970_v25 = vmul.f32 0.16666667, %v906_v49  ;;  %v872_v57 = vmul.f32 %v808_v32, %v486_v21  ;;  %v904_v59 = vmul.f32 %v840_v33, %v614_v24  ;;  %v1189_v24 = vpop.f32.mrf.mxu0 }
 0x145   :  { %v811_v60 = vmin.f32 %v747_v51, 6.0  ;;  %v843_v61 = vmin.f32 %v779_v39, 6.0  ;;  %v745_v43 = vmax.f32 %v681_v52, 0.0  ;;  %v777_v58 = vmax.f32 %v713_v55, 0.0 }
 0x146   :  { %1002 = vst [vmem:[#allocation7 + $0xb0] sm:$0xff] %v938_v56  ;;  %1034 = vst [vmem:[#allocation7 + $0x1b0] sm:$0xff] %v970_v25  ;;  %v936_v26 = vmul.f32 0.16666667, %v872_v57  ;;  %v968_v62 = vmul.f32 0.16666667, %v904_v59  ;;  %v510_v2 = vadd.f32 %v1185_v12, %v1388_v40  ;;  %v638_v3 = vadd.f32 %v1217_v14, %v1388_v40  ;;  %v517_v41 = vpop.f32.mrf.mxu0 }
 0x147   :  { %v875_v6 = vmul.f32 %v811_v60, %v497_v18  ;;  %v907_v46 = vmul.f32 %v843_v61, %v625_v19  ;;  %v809_v7 = vmin.f32 %v745_v43, 6.0  ;;  %v841_v47 = vmin.f32 %v777_v58, 6.0  ;;  %v1222_v60 = vpop.f32.mrf.mxu1 }
 0x148   :  { %1000 = vst [vmem:[#allocation7 + $0xa0] sm:$0xff] %v936_v26  ;;  %1032 = vst [vmem:[#allocation7 + $0x1a0] sm:$0xff] %v968_v62  ;;  %v686_v8 = vadd.f32 3.0, %v510_v2  ;;  %v718_v11 = vadd.f32 3.0, %v638_v3  ;;  %v502_v53 = vadd.f32 %v1388_v40, %v501_v0  ;;  %v630_v54 = vadd.f32 %v1388_v40, %v629_v34  ;;  %v1190_v59 = vpop.f32.mrf.mxu0 }
 0x149   :  { %v939_v13 = vmul.f32 0.16666667, %v875_v6  ;;  %v971_v15 = vmul.f32 0.16666667, %v907_v46  ;;  %v873_v16 = vmul.f32 %v809_v7, %v489_v10  ;;  %v905_v12 = vmul.f32 %v841_v47, %v617_v45 }
 0x14a   :  { %v750_v17 = vmax.f32 %v686_v8, 0.0  ;;  %v782_v14 = vmax.f32 %v718_v11, 0.0  ;;  %v684_v20 = vadd.f32 3.0, %v502_v53  ;;  %v716_v21 = vadd.f32 3.0, %v630_v54 }
 0x14b   :  { %1003 = vst [vmem:[#allocation7 + $0xb8] sm:$0xff] %v939_v13  ;;  %1035 = vst [vmem:[#allocation7 + $0x1b8] sm:$0xff] %v971_v15  ;;  %v937_v27 = vmul.f32 0.16666667, %v873_v16  ;;  %v969_v28 = vmul.f32 0.16666667, %v905_v12  ;;  %v513_v44 = vadd.f32 %v1186_v38, %v1388_v40  ;;  %v641_v29 = vadd.f32 %v1218_v50, %v1388_v40  ;;  %v648_v13 = vpop.f32.mrf.mxu1 }
 0x14c   :  { %v814_v30 = vmin.f32 %v750_v17, 6.0  ;;  %v846_v63 = vmin.f32 %v782_v14, 6.0  ;;  %v748_v31 = vmax.f32 %v684_v20, 0.0  ;;  %v780_v0 = vmax.f32 %v716_v21, 0.0 }
 0x14d   :  { %1001 = vst [vmem:[#allocation7 + $0xa8] sm:$0xff] %v937_v27  ;;  %1033 = vst [vmem:[#allocation7 + $0x1a8] sm:$0xff] %v969_v28  ;;  %v687_v34 = vadd.f32 3.0, %v513_v44  ;;  %v719_v35 = vadd.f32 3.0, %v641_v29  ;;  %v505_v22 = vadd.f32 %v1388_v40, %v504_v4  ;;  %v633_v18 = vadd.f32 %v1388_v40, %v632_v5 }
 0x14e   :  { %v878_v19 = vmul.f32 %v814_v30, %v510_v2  ;;  %v910_v36 = vmul.f32 %v846_v63, %v638_v3  ;;  %v812_v23 = vmin.f32 %v748_v31, 6.0  ;;  %v844_v37 = vmin.f32 %v780_v0, 6.0 }
 0x14f   :  { %v751_v9 = vmax.f32 %v687_v34, 0.0  ;;  %v783_v10 = vmax.f32 %v719_v35, 0.0  ;;  %v685_v45 = vadd.f32 3.0, %v505_v22  ;;  %v717_v48 = vadd.f32 3.0, %v633_v18 }
 0x150   :  { %v942_v49 = vmul.f32 0.16666667, %v878_v19  ;;  %v974_v32 = vmul.f32 0.16666667, %v910_v36  ;;  %v876_v33 = vmul.f32 %v812_v23, %v502_v53  ;;  %v908_v38 = vmul.f32 %v844_v37, %v630_v54  ;;  %v520_v54 = vpop.f32.mrf.mxu0 }
 0x151   :  { %v815_v50 = vmin.f32 %v751_v9, 6.0  ;;  %v847_v51 = vmin.f32 %v783_v10, 6.0  ;;  %v749_v39 = vmax.f32 %v685_v45, 0.0  ;;  %v781_v52 = vmax.f32 %v717_v48, 0.0 }
 0x152   :  { %1006 = vst [vmem:[#allocation7 + $0xd0] sm:$0xff] %v942_v49  ;;  %1038 = vst [vmem:[#allocation7 + $0x1d0] sm:$0xff] %v974_v32  ;;  %v940_v55 = vmul.f32 0.16666667, %v876_v33  ;;  %v972_v56 = vmul.f32 0.16666667, %v908_v38  ;;  %v526_v25 = vadd.f32 %v1189_v24, %v1388_v40  ;;  %v654_v57 = vadd.f32 %v1221_v1, %v1388_v40 }
 0x153   :  { %v879_v61 = vmul.f32 %v815_v50, %v513_v44  ;;  %v911_v43 = vmul.f32 %v847_v51, %v641_v29  ;;  %v813_v58 = vmin.f32 %v749_v39, 6.0  ;;  %v845_v26 = vmin.f32 %v781_v52, 6.0 }
 0x154   :  { %1004 = vst [vmem:[#allocation7 + $0xc0] sm:$0xff] %v940_v55  ;;  %1036 = vst [vmem:[#allocation7 + $0x1c0] sm:$0xff] %v972_v56  ;;  %v690_v62 = vadd.f32 3.0, %v526_v25  ;;  %v722_v2 = vadd.f32 3.0, %v654_v57  ;;  %v518_v3 = vadd.f32 %v1388_v40, %v517_v41  ;;  %v646_v4 = vadd.f32 %v1388_v40, %v645_v42 }
 0x155   :  { %v943_v5 = vmul.f32 0.16666667, %v879_v61  ;;  %v975_v6 = vmul.f32 0.16666667, %v911_v43  ;;  %v877_v46 = vmul.f32 %v813_v58, %v505_v22  ;;  %v909_v7 = vmul.f32 %v845_v26, %v633_v18 }
 0x156   :  { %v754_v47 = vmax.f32 %v690_v62, 0.0  ;;  %v786_v8 = vmax.f32 %v722_v2, 0.0  ;;  %v688_v11 = vadd.f32 3.0, %v518_v3  ;;  %v720_v53 = vadd.f32 3.0, %v646_v4 }
 0x157   :  { %1007 = vst [vmem:[#allocation7 + $0xd8] sm:$0xff] %v943_v5  ;;  %1039 = vst [vmem:[#allocation7 + $0x1d8] sm:$0xff] %v975_v6  ;;  %v941_v15 = vmul.f32 0.16666667, %v877_v46  ;;  %v973_v16 = vmul.f32 0.16666667, %v909_v7  ;;  %v529_v12 = vadd.f32 %v1190_v59, %v1388_v40  ;;  %v657_v17 = vadd.f32 %v1222_v60, %v1388_v40 }
 0x158   :  { %v818_v14 = vmin.f32 %v754_v47, 6.0  ;;  %v850_v20 = vmin.f32 %v786_v8, 6.0  ;;  %v752_v21 = vmax.f32 %v688_v11, 0.0  ;;  %v784_v24 = vmax.f32 %v720_v53, 0.0 }
 0x159   :  { %1005 = vst [vmem:[#allocation7 + $0xc8] sm:$0xff] %v941_v15  ;;  %1037 = vst [vmem:[#allocation7 + $0x1c8] sm:$0xff] %v973_v16  ;;  %v691_v1 = vadd.f32 3.0, %v529_v12  ;;  %v723_v27 = vadd.f32 3.0, %v657_v17  ;;  %v521_v28 = vadd.f32 %v1388_v40, %v520_v54  ;;  %v649_v44 = vadd.f32 %v1388_v40, %v648_v13 }
 0x15a   :  { %v882_v29 = vmul.f32 %v818_v14, %v526_v25  ;;  %v914_v30 = vmul.f32 %v850_v20, %v654_v57  ;;  %v816_v63 = vmin.f32 %v752_v21, 6.0  ;;  %v848_v31 = vmin.f32 %v784_v24, 6.0 }
 0x15b   :  { %v755_v0 = vmax.f32 %v691_v1, 0.0  ;;  %v787_v34 = vmax.f32 %v723_v27, 0.0  ;;  %v689_v35 = vadd.f32 3.0, %v521_v28  ;;  %v721_v22 = vadd.f32 3.0, %v649_v44 }
 0x15c   :  { %v946_v18 = vmul.f32 0.16666667, %v882_v29  ;;  %v978_v19 = vmul.f32 0.16666667, %v914_v30  ;;  %v880_v36 = vmul.f32 %v816_v63, %v518_v3  ;;  %v912_v23 = vmul.f32 %v848_v31, %v646_v4 }
 0x15d   :  { %v819_v37 = vmin.f32 %v755_v0, 6.0  ;;  %v851_v41 = vmin.f32 %v787_v34, 6.0  ;;  %v753_v42 = vmax.f32 %v689_v35, 0.0  ;;  %v785_v9 = vmax.f32 %v721_v22, 0.0 }
 0x15e   :  { %1010 = vst [vmem:[#allocation7 + $0xf0] sm:$0xff] %v946_v18  ;;  %1042 = vst [vmem:[#allocation7 + $0x1f0] sm:$0xff] %v978_v19  ;;  %v944_v10 = vmul.f32 0.16666667, %v880_v36  ;;  %v976_v40 = vmul.f32 0.16666667, %v912_v23 }
 0x15f   :  { %v883_v45 = vmul.f32 %v819_v37, %v529_v12  ;;  %v915_v48 = vmul.f32 %v851_v41, %v657_v17  ;;  %v817_v49 = vmin.f32 %v753_v42, 6.0  ;;  %v849_v32 = vmin.f32 %v785_v9, 6.0 }
 0x160   :  { %1008 = vst [vmem:[#allocation7 + $0xe0] sm:$0xff] %v944_v10  ;;  %1040 = vst [vmem:[#allocation7 + $0x1e0] sm:$0xff] %v976_v40 }
 0x161   :  { %v947_v33 = vmul.f32 0.16666667, %v883_v45  ;;  %v979_v38 = vmul.f32 0.16666667, %v915_v48  ;;  %v881_v50 = vmul.f32 %v817_v49, %v521_v28  ;;  %v913_v51 = vmul.f32 %v849_v32, %v649_v44 }
 0x163   :  { %1011 = vst [vmem:[#allocation7 + $0xf8] sm:$0xff] %v947_v33  ;;  %1043 = vst [vmem:[#allocation7 + $0x1f8] sm:$0xff] %v979_v38  ;;  %v945_v39 = vmul.f32 0.16666667, %v881_v50  ;;  %v977_v52 = vmul.f32 0.16666667, %v913_v51 }
 0x165   :  { %1009 = vst [vmem:[#allocation7 + $0xe8] sm:$0xff] %v945_v39  ;;  %1041 = vst [vmem:[#allocation7 + $0x1e8] sm:$0xff] %v977_v52 }
 0x166   :  { %1337 = shalt.err (!%p1334_p0)
}
 0x167   :  { %s1357_s26 = smov 128   ;;  %s1358_s27 = smov 8  }
 0x168   :  { %1055 = dma.vmem_to_hbm [thread:$0]  %s1050_s24, 8192, %s1526_s3, [#allocation4], %s1357_s26, %s1357_s26, %s1358_s27  }
 0x169   :  { %1350 = dma.done.wait [#allocation4], 8192  }
 0x16a   :  { %1351 = vsyncadd [#allocation4], 4294959104 }
 0x16b   :  { %1059 = vsyncpa [#allocation3], 1 }
 0x16c   :  { %1060 = vsyncpa [#allocation6], 1 }
 0x16d   :  { %1061 = vsyncpa [#allocation4], 1 }

</bundles_post_ra>
